<compile_context>
chip_gen: v7x
topology: tpu7x:2x2x1
jax: 0.10.0
libtpu: 0.0.40
codegen_flags: <defaults>
</compile_context>

<pallas_src>
import functools
import math

import jax
import jax.numpy as jnp
from jax.experimental import pallas as pl
from jax.experimental.pallas import tpu as pltpu


def _label_smoothing_kl_kernel(logits_ref, labels_ref, out_ref, acc_ref, *,
                               smoothing, vocab):
    # grid = (num_splits, tiles_per_split): axis 0 -> one output block / TensorCore,
    # axis 1 -> "arbitrary" reduction over row tiles.
    i = pl.program_id(1)

    @pl.when(i == 0)
    def _init():
        acc_ref[...] = jnp.zeros_like(acc_ref)

    lab = labels_ref[...]                               # (TM, 1) int32; -1 => masked/pad
    valid = lab >= 0                                    # (TM, 1) bool
    msk = valid.astype(jnp.float32)

    x = logits_ref[...].astype(jnp.float32)             # (TM, V) f32; per-tile upcast (bf16 ok)
    tm, v = x.shape
    # Zero invalid rows BEFORE any reduction / exp: OOB garbage from the ragged last
    # tile (possibly NaN/Inf bit patterns) must never reach the accumulator.
    x = jnp.where(valid, x, 0.0)

    # All full-tile reductions over raw x; only the lse pass touches exp(x - m).
    m = jnp.max(x, axis=-1, keepdims=True)              # (TM, 1)
    row_sum = jnp.sum(x, axis=-1, keepdims=True)        # (TM, 1)
    col = jax.lax.broadcasted_iota(jnp.int32, (tm, v), 1)
    x_lab = jnp.sum(jnp.where(col == lab, x, 0.0), axis=-1, keepdims=True)    # (TM, 1)
    lse = jnp.log(jnp.sum(jnp.exp(x - m), axis=-1, keepdims=True))            # rel. to m

    sum_z = row_sum - vocab * m                          # sum_v (x - m)
    z_lab = x_lab - m

    off = smoothing / (vocab - 1)
    # sum_v t * logp with t = off everywhere except (1 - smoothing) at the label:
    t_dot_logp = off * (sum_z - vocab * lse) + (1.0 - smoothing - off) * (z_lab - lse)

    # sum_v xlogy(t, t) for an unmasked row is a constant (t == 0 terms contribute 0):
    c1 = (1.0 - smoothing) * math.log(1.0 - smoothing) if smoothing < 1.0 else 0.0
    c2 = smoothing * math.log(off) if smoothing > 0.0 else 0.0
    c_const = c1 + c2

    row_loss = msk * (c_const - t_dot_logp)              # (TM, 1); masked rows contribute 0
    acc_ref[...] += jnp.sum(row_loss, axis=0, keepdims=True)     # (1, 1) scalar accumulator

    @pl.when(i == pl.num_programs(1) - 1)
    def _finalize():
        out_ref[0] = acc_ref[...]                         # one scalar per split


def _vmem_capacity_bytes():
    try:
        info = pltpu.get_tpu_info()
        cap = getattr(info, "vmem_capacity_bytes", None)
        if cap:
            return int(cap)
    except Exception:
        pass
    return 64 * 1024 * 1024   # conservative default (v7x per-TensorCore VMEM)


def _num_tensorcores():
    # Only trust unambiguous TensorCore-count signals; default to 1 (always correct).
    try:
        info = pltpu.get_tpu_info()
        for attr in ("num_tensorcores", "tensorcores_per_chip", "num_cores_per_chip"):
            val = getattr(info, attr, None)
            if val:
                return max(1, min(2, int(val)))
    except Exception:
        pass
    try:
        kind = jax.devices()[0].device_kind.lower()
        if "v7" in kind:
            return 2
    except Exception:
        pass
    return 1


def _round_up(x, m):
    return (x + m - 1) // m * m


def label_smoothing_loss(logits, attention_mask, labels, smoothing, *, num_splits=None):
    """logits: (B, L, V) f32/bf16; attention_mask: (B, L) 0/1; labels: (B, L) int."""
    b, l, v = logits.shape
    n = b * l

    x = logits.reshape(n, v)                  # metadata-only reshape; HBM dtype kept (bf16 ok)
    # Fold the 0/1 attention mask into the labels: -1 marks masked / padding rows.
    lab = jnp.where(attention_mask.reshape(n, 1) > 0,
                    labels.reshape(n, 1).astype(jnp.int32),
                    jnp.int32(-1))

    # Degenerate tiny-N case only: pad logits up to 8 rows so the block shape is legal.
    if n < 8:
        pad = 8 - n
        x = jnp.pad(x, ((0, pad), (0, 0)))
        lab = jnp.pad(lab, ((0, pad), (0, 0)), constant_values=-1)
        n_rows = 8
    else:
        n_rows = n

    if num_splits is None:
        num_splits = _num_tensorcores()
    num_splits = max(1, int(num_splits))

    itemsize = jnp.dtype(x.dtype).itemsize
    cap = _vmem_capacity_bytes()
    usable = int(cap * 0.70)                  # headroom for compiler temporaries / misc

    # Real per-row VMEM bytes: double-buffered logits block (HBM dtype) + lane-padded
    # (tm, 1) label block, plus ~2x (tm, V) f32 in-kernel temporaries (upcast + exp).
    per_row = 2 * (v * itemsize + 128 * 4) + 2 * v * 4
    tm = usable // per_row
    tm = max(8, (tm // 8) * 8)
    tm = min(tm, (n_rows // 8) * 8)                               # block must fit the array
    tm = min(tm, _round_up(pl.cdiv(n_rows, num_splits), 8))       # keep all splits busy
    tm = max(8, tm)

    tiles_total = pl.cdiv(n_rows, tm)
    num_splits = max(1, min(num_splits, tiles_total))
    tiles_per_split = pl.cdiv(tiles_total, num_splits)

    # Pad ONLY the tiny label stream so it exactly covers the grid; logits stay ragged.
    n_lab = num_splits * tiles_per_split * tm
    if n_lab > n_rows:
        lab = jnp.pad(lab, ((0, n_lab - n_rows), (0, 0)), constant_values=-1)

    def logits_map(c, i):
        t = c * tiles_per_split + i
        return (jnp.minimum(t, tiles_total - 1), 0)   # never an entirely-OOB block

    def labels_map(c, i):
        return (c * tiles_per_split + i, 0)

    logits_block_bytes = tm * v * itemsize
    logits_spec = pl.BlockSpec((tm, v), logits_map)
    if logits_block_bytes < (2 << 20) and tiles_per_split >= 3 and hasattr(pl, "Buffered"):
        try:   # deeper pipelining hides per-step overhead for small blocks
            logits_spec = pl.BlockSpec((tm, v), logits_map, pipeline_mode=pl.Buffered(3))
        except TypeError:
            pass

    # VMEM limit derived from the same footprint numbers (+ margin).
    needed = (3 * logits_block_bytes            # up to triple-buffered input
              + 2 * tm * 128 * 4                # label double buffer (lane padded)
              + 2 * tm * v * 4                  # in-kernel f32 temporaries
              + (2 << 20))
    vmem_limit = int(min(cap, max(needed, 32 << 20)))

    if num_splits > 1 and hasattr(pltpu, "CORE_PARALLEL"):
        dim_sem = (pltpu.CORE_PARALLEL, pltpu.ARBITRARY)
    elif num_splits > 1:
        dim_sem = ("parallel", "arbitrary")
    else:
        dim_sem = ("arbitrary", "arbitrary")

    kernel = functools.partial(_label_smoothing_kl_kernel,
                               smoothing=float(smoothing), vocab=v)

    out = pl.pallas_call(
        kernel,
        out_shape=jax.ShapeDtypeStruct((num_splits, 1, 1), jnp.float32),
        grid_spec=pltpu.PrefetchScalarGridSpec(
            num_scalar_prefetch=0,
            grid=(num_splits, tiles_per_split),
            in_specs=[
                logits_spec,                           # full-vocab row tiles (ragged tail OK)
                pl.BlockSpec((tm, 1), labels_map),     # labels with folded mask (-1 = masked)
            ],
            out_specs=pl.BlockSpec((1, 1, 1), lambda c, i: (c, 0, 0)),
            scratch_shapes=[pltpu.VMEM((1, 1), jnp.float32)],
        ),
        compiler_params=pltpu.CompilerParams(
            dimension_semantics=dim_sem,
            vmem_limit_bytes=vmem_limit,
        ),
    )(x, lab)

    # (num_splits, 1, 1) partial sums -> scalar.
    return jnp.sum(out)


def _reference(logits, attention_mask, labels, smoothing):
    b, l, v = logits.shape
    t = jnp.full((b, l, v), smoothing / (v - 1), dtype=jnp.float32)
    onehot = jax.nn.one_hot(labels, v, dtype=jnp.float32)
    t = t * (1.0 - onehot) + onehot * (1.0 - smoothing)
    t = t * attention_mask[:, :, None].astype(jnp.float32)
    logp = jax.nn.log_softmax(logits.astype(jnp.float32), axis=2)
    xlogy = jnp.where(t > 0, t * jnp.log(jnp.where(t > 0, t, 1.0)), 0.0)
    return jnp.sum(xlogy - t * logp)


if __name__ == "__main__":
    key = jax.random.PRNGKey(0)
    smoothing = 0.1              # module __init__ buffer value

    # Test 1: row count aligned to the tile.
    B, L, V = 2, 8, 128          # small shapes; V multiple of 128 (lane width)
    k1, k2, k3, k4 = jax.random.split(key, 4)
    logits = jax.random.normal(k1, (B, L, V), dtype=jnp.float32)
    labels = jax.random.randint(k2, (B, L), 0, V, dtype=jnp.int32)
    attention_mask = jnp.concatenate(
        [jnp.ones((B, L - 2), jnp.float32), jnp.zeros((B, 2), jnp.float32)], axis=1)

    loss = jax.block_until_ready(
        label_smoothing_loss(logits, attention_mask, labels, smoothing))
    ref = _reference(logits, attention_mask, labels, smoothing)
    assert jnp.allclose(loss, ref, rtol=1e-4, atol=1e-4), (loss, ref)

    # Test 2: ragged row count (exercises the partial last tile + label-padding path).
    B2, L2 = 3, 7
    logits2 = jax.random.normal(k3, (B2, L2, V), dtype=jnp.float32)
    labels2 = jax.random.randint(k4, (B2, L2), 0, V, dtype=jnp.int32)
    mask2 = (jax.random.uniform(jax.random.PRNGKey(1), (B2, L2)) > 0.3).astype(jnp.float32)

    loss2 = jax.block_until_ready(
        label_smoothing_loss(logits2, mask2, labels2, smoothing))
    ref2 = _reference(logits2, mask2, labels2, smoothing)
    assert jnp.allclose(loss2, ref2, rtol=1e-4, atol=1e-4), (loss2, ref2)

    print("KERNEL_OK")
</pallas_src>

<mosaic_0001>
module attributes {stable_mosaic.version = 11 : i64} {
  func.func @_label_smoothing_kl_kernel(%arg0: i32, %arg1: i32, %arg2: memref<16x128xf32, #tpu.memory_space<vmem>>, %arg3: memref<16x1xi32, #tpu.memory_space<vmem>>, %arg4: memref<1x1x1xf32, #tpu.memory_space<vmem>>, %arg5: memref<1x1xf32, #tpu.memory_space<vmem>>) attributes {dimension_semantics = [#tpu.dimension_semantics<arbitrary>, #tpu.dimension_semantics<arbitrary>], iteration_bounds = array<i64: 1, 1>, scalar_prefetch = 0 : i64, scratch_operands = 1 : i64, tpu.core_type = #tpu.core_type<tc>, window_params = [{transform_indices = @transform_0, window_bounds = array<i64: 16, 128>}, {transform_indices = @transform_1, window_bounds = array<i64: 16, 1>}, {transform_indices = @transform_2, window_bounds = array<i64: 1, 1, 1>}]} {
    %c0_i32 = arith.constant 0 : i32
    %0 = arith.cmpi eq, %arg1, %c0_i32 : i32
    %1 = arith.extui %0 : i1 to i32
    %c0_i32_0 = arith.constant 0 : i32
    %2 = arith.cmpi ne, %1, %c0_i32_0 : i32
    scf.if %2 {
      %cst_22 = arith.constant 0.000000e+00 : f32
      %54 = vector.broadcast %cst_22 : f32 to vector<1x1xf32>
      %c0_23 = arith.constant 0 : index
      %c0_24 = arith.constant 0 : index
      %55 = vector.load %arg5[%c0_23, %c0_24] : memref<1x1xf32, #tpu.memory_space<vmem>>, vector<1x1xf32>
      tpu.vector_store %arg5[%c0_23, %c0_24], %54 {strides = array<i32>} : memref<1x1xf32, #tpu.memory_space<vmem>>, vector<1x1xf32>,
    } else {
    }
    %c0 = arith.constant 0 : index
    %c0_1 = arith.constant 0 : index
    %3 = vector.load %arg3[%c0, %c0_1] : memref<16x1xi32, #tpu.memory_space<vmem>>, vector<16x1xi32>
    %c0_i32_2 = arith.constant 0 : i32
    %4 = vector.broadcast %c0_i32_2 : i32 to vector<16x1xi32>
    %5 = arith.cmpi sge, %3, %4 : vector<16x1xi32>
    %6 = arith.extui %5 : vector<16x1xi1> to vector<16x1xi32>
    %7 = arith.sitofp %6 : vector<16x1xi32> to vector<16x1xf32>
    %c0_3 = arith.constant 0 : index
    %c0_4 = arith.constant 0 : index
    %8 = vector.load %arg2[%c0_3, %c0_4] : memref<16x128xf32, #tpu.memory_space<vmem>>, vector<16x128xf32>
    %cst = arith.constant 0.000000e+00 : f32
    %9 = vector.shape_cast %5 : vector<16x1xi1> to vector<16x1xi1>
    %10 = vector.broadcast %9 : vector<16x1xi1> to vector<16x128xi1>
    %11 = vector.broadcast %cst : f32 to vector<16x128xf32>
    %12 = arith.select %10, %8, %11 : vector<16x128xi1>, vector<16x128xf32>
    %cst_5 = arith.constant dense<0xFF800000> : vector<16xf32>
    %13 = vector.multi_reduction <maximumf>, %12, %cst_5 [1] : vector<16x128xf32> to vector<16xf32>
    %14 = vector.shape_cast %13 : vector<16xf32> to vector<16x1xf32>
    %cst_6 = arith.constant dense<0.000000e+00> : vector<16xf32>
    %15 = vector.multi_reduction <add>, %12, %cst_6 [1] : vector<16x128xf32> to vector<16xf32>
    %16 = vector.shape_cast %15 : vector<16xf32> to vector<16x1xf32>
    %17 = tpu.iota {dimensions = array<i32: 1>} : vector<16x128xi32>
    %18 = vector.broadcast %3 : vector<16x1xi32> to vector<16x128xi32>
    %19 = arith.cmpi eq, %17, %18 : vector<16x128xi32>
    %cst_7 = arith.constant 0.000000e+00 : f32
    %20 = vector.broadcast %cst_7 : f32 to vector<16x128xf32>
    %21 = arith.select %19, %12, %20 : vector<16x128xi1>, vector<16x128xf32>
    %cst_8 = arith.constant dense<0.000000e+00> : vector<16xf32>
    %22 = vector.multi_reduction <add>, %21, %cst_8 [1] : vector<16x128xf32> to vector<16xf32>
    %23 = vector.shape_cast %22 : vector<16xf32> to vector<16x1xf32>
    %24 = vector.broadcast %14 : vector<16x1xf32> to vector<16x128xf32>
    %25 = arith.subf %12, %24 : vector<16x128xf32>
    %26 = math.exp %25 : vector<16x128xf32>
    %cst_9 = arith.constant dense<0.000000e+00> : vector<16xf32>
    %27 = vector.multi_reduction <add>, %26, %cst_9 [1] : vector<16x128xf32> to vector<16xf32>
    %28 = vector.shape_cast %27 : vector<16xf32> to vector<16x1xf32>
    %29 = math.log %28 : vector<16x1xf32>
    %cst_10 = arith.constant 1.280000e+02 : f32
    %30 = vector.broadcast %cst_10 : f32 to vector<16x1xf32>
    %31 = arith.mulf %30, %14 : vector<16x1xf32>
    %32 = arith.subf %16, %31 : vector<16x1xf32>
    %33 = arith.subf %23, %14 : vector<16x1xf32>
    %cst_11 = arith.constant 1.280000e+02 : f32
    %34 = vector.broadcast %cst_11 : f32 to vector<16x1xf32>
    %35 = arith.mulf %34, %29 : vector<16x1xf32>
    %36 = arith.subf %32, %35 : vector<16x1xf32>
    %cst_12 = arith.constant 7.87401571E-4 : f32
    %37 = vector.broadcast %cst_12 : f32 to vector<16x1xf32>
    %38 = arith.mulf %37, %36 : vector<16x1xf32>
    %39 = arith.subf %33, %29 : vector<16x1xf32>
    %cst_13 = arith.constant 0.899212599 : f32
    %40 = vector.broadcast %cst_13 : f32 to vector<16x1xf32>
    %41 = arith.mulf %40, %39 : vector<16x1xf32>
    %42 = arith.addf %38, %41 : vector<16x1xf32>
    %cst_14 = arith.constant -0.809501707 : f32
    %43 = vector.broadcast %cst_14 : f32 to vector<16x1xf32>
    %44 = arith.subf %43, %42 : vector<16x1xf32>
    %45 = arith.mulf %7, %44 : vector<16x1xf32>
    %c0_15 = arith.constant 0 : index
    %c0_16 = arith.constant 0 : index
    %46 = vector.load %arg5[%c0_15, %c0_16] : memref<1x1xf32, #tpu.memory_space<vmem>>, vector<1x1xf32>
    %cst_17 = arith.constant dense<0.000000e+00> : vector<1xf32>
    %47 = vector.multi_reduction <add>, %45, %cst_17 [0] : vector<16x1xf32> to vector<1xf32>
    %48 = vector.shape_cast %47 : vector<1xf32> to vector<1x1xf32>
    %49 = arith.addf %46, %48 : vector<1x1xf32>
    %c0_18 = arith.constant 0 : index
    %c0_19 = arith.constant 0 : index
    %50 = vector.load %arg5[%c0_18, %c0_19] : memref<1x1xf32, #tpu.memory_space<vmem>>, vector<1x1xf32>
    tpu.vector_store %arg5[%c0_18, %c0_19], %49 {strides = array<i32>} : memref<1x1xf32, #tpu.memory_space<vmem>>, vector<1x1xf32>,
    %c0_i32_20 = arith.constant 0 : i32
    %51 = arith.cmpi eq, %arg1, %c0_i32_20 : i32
    %52 = arith.extui %51 : i1 to i32
    %c0_i32_21 = arith.constant 0 : i32
    %53 = arith.cmpi ne, %52, %c0_i32_21 : i32
    scf.if %53 {
      %c0_22 = arith.constant 0 : index
      %c0_23 = arith.constant 0 : index
      %54 = vector.load %arg5[%c0_22, %c0_23] : memref<1x1xf32, #tpu.memory_space<vmem>>, vector<1x1xf32>
      %c0_24 = arith.constant 0 : index
      %c0_25 = arith.constant 0 : index
      %c0_26 = arith.constant 0 : index
      %55 = vector.load %arg4[%c0_24, %c0_25, %c0_26] : memref<1x1x1xf32, #tpu.memory_space<vmem>>, vector<1x1x1xf32>
      %56 = vector.shape_cast %55 : vector<1x1x1xf32> to vector<1x1xf32>
      %57 = vector.shape_cast %54 : vector<1x1xf32> to vector<1x1x1xf32>
      tpu.vector_store %arg4[%c0_24, %c0_25, %c0_26], %57 {strides = array<i32>} : memref<1x1x1xf32, #tpu.memory_space<vmem>>, vector<1x1x1xf32>,
    } else {
    }
    return
  }
  func.func @transform_0(%arg0: i32, %arg1: i32) -> (i32, i32) {
    %c1_i32 = arith.constant 1 : i32
    %0 = arith.muli %arg0, %c1_i32 : i32
    %1 = arith.addi %0, %arg1 : i32
    %c0_i32 = arith.constant 0 : i32
    %2 = arith.minsi %1, %c0_i32 : i32
    %c0_i32_0 = arith.constant 0 : i32
    %c0_i32_1 = arith.constant 0 : i32
    return %2, %c0_i32_0 : i32, i32
  }
  func.func @transform_1(%arg0: i32, %arg1: i32) -> (i32, i32) {
    %c1_i32 = arith.constant 1 : i32
    %0 = arith.muli %arg0, %c1_i32 : i32
    %1 = arith.addi %0, %arg1 : i32
    %c0_i32 = arith.constant 0 : i32
    %c0_i32_0 = arith.constant 0 : i32
    return %1, %c0_i32 : i32, i32
  }
  func.func @transform_2(%arg0: i32, %arg1: i32) -> (i32, i32, i32) {
    %c0_i32 = arith.constant 0 : i32
    %c0_i32_0 = arith.constant 0 : i32
    %c0_i32_1 = arith.constant 0 : i32
    return %arg0, %c0_i32, %c0_i32_0 : i32, i32, i32
  }
}

</mosaic_0001>

<bundles_post_ra>
// kernel: tpu_custom_call.1
= control target key start
LH: loop header
LB: loop body
LE: loop exit
PB: predicated region body
PF: predicated region fallthrough
CT: control target
= control target key end

     0   :  { %v236_v2 = vmov 0   ;;  %s297_s0 = inlined_call_operand.vmem [shape: f32[16,128], index: 0, kind: input, shape index: {}]   ;;  %s298_s1 = inlined_call_operand.vmem [shape: s32[16,1], index: 1, kind: input, shape index: {}]   ;;  %s299_s2 = inlined_call_operand.hbm [shape: f32[1,1,1], index: 2, kind: output, shape index: {}]  }
   0x1   :  { %v257_v0 = vld [vmem:[%s298_s1] sm:$0xff]  ;;  %v262_v1 = vld [vmem:[%s298_s1 + $0x8] sm:$0xff]  ;;  %202 = vset.pattern.permute.xlu0 %v236_v2  ;;  %203 = vset.pattern.permute.xlu1 %v236_v2 }
   0x2   :  { %vm74_vm0 = vcmp.ge.s32.totalorder %v257_v0, 0  ;;  %vm75_vm1 = vcmp.ge.s32.totalorder %v262_v1, 0 }
   0x3   :  { %7 = vsyncpa [#allocation4], 0  ;;  %v76_v3 = vsel %vm74_vm0, 1, %v236_v2  ;;  %v77_v4 = vsel %vm75_vm1, 1, %v236_v2  ;;  %v80_v5 = vld [vmem:[%s297_s0] sm:$0xff]  ;;  %v81_v8 = vld [vmem:[%s297_s0 + $0x8] sm:$0xff]  ;;  %v100_v18 = vlaneseq }
   0x4   :  { %83 = vperm.xlu0 %202, %v76_v3   ;;  %vm70_vm6 = vcmask 0   ;;  %v237_v25 = vmov 0.0   ;;  %vm153_vm7 = vcmask 7168   ;;  %s238_s0 = smov [#allocation3]  }
   0x5   :  { %v101_v20 = vand.u32 127, %v100_v18  ;;  %71 = vst.msk [vmem:[#allocation2] sm:$0x1] %vm70_vm6, %v237_v25  ;;  %v197_v54 = vsel %vm74_vm0, 1.0, %v237_v25  ;;  %v198_v56 = vsel %vm75_vm1, 1.0, %v237_v25  ;;  %s177_s16 = sshll.u32 %s238_s0, 4  ;;  %s178_s16 = int_to_ptr.vmem [resolvable:$true] %s177_s16 }
   0x6   :  { %s212_s17 = scalar_lea.vmem %s178_s16, 16  ;;  %s216_s18 = scalar_lea.vmem %s178_s16, 32 }
   0x7   :  { %p213_p0 = scmp.ne.s32.totalorder %s178_s16, %s212_s17  ;;  %p217_p1 = scmp.lt.s32.totalorder %s178_s16, %s178_s16 }
   0x8   :  { %86 = vperm.xlu0 %202, %v77_v4   ;;  %p218_p2 = scmp.lt.s32.totalorder %s216_s18, %s212_s17 }
   0xa   :  { %p219_p3 = por %p218_p2, %p217_p1 }
   0xc   :  { %103 = vperm.xlu0 %202, %v257_v0   ;;  %p220_p4 = pnand %p219_p3, %p213_p0 }
  0x83   :  { %v84_v6 = vpop.permute.xlu0 %83 }
  0x84   :  { %vm88_vm2 = vcmp.eq.s32.totalorder %v84_v6, 1  ;;  %v152_v6 = vld [vmem:[#allocation2] sm:$0x1] }
  0x85   :  { %v90_v7 = vsel %vm88_vm2, %v80_v5, 0.0 }
  0x86   :  { %92 = vmax.xlane.f32.xlu1 %v90_v7 }
  0x87   :  { %v87_v9 = vpop.permute.xlu0 %86 }
  0x88   :  { %vm89_vm3 = vcmp.eq.s32.totalorder %v87_v9, 1 }
  0x89   :  { %v91_v10 = vsel %vm89_vm3, %v81_v8, 0.0 }
  0x8a   :  { %94 = vmax.xlane.f32.xlu1 %v91_v10 }
  0x8b   :  { %v104_v21 = vpop.permute.xlu0 %103 }
  0x8c   :  { %vm108_vm4 = vcmp.eq.s32.totalorder %v101_v20, %v104_v21 }
  0x8d   :  { %v110_v23 = vsel %vm108_vm4, %v90_v7, 0.0 }
  0x9b   :  { %106 = vperm.xlu1 %203, %v262_v1  }
 0x113   :  { %v93_v11 = vpop.xlane.xlu1 %92 }
 0x114   :  { %v116_v12 = vsub.f32 %v90_v7, %v93_v11  ;;  %v130_v32 = vmul.f32 128.0, %v93_v11 }
 0x116   :  { %v118_v13 = vmul.f32 1.442695, %v116_v12 }
 0x117   :  { %v95_v14 = vpop.xlane.xlu1 %94 }
 0x118   :  { %204 = vpow2.f32 %v118_v13  ;;  %v117_v15 = vsub.f32 %v91_v10, %v95_v14  ;;  %v131_v41 = vmul.f32 128.0, %v95_v14 }
 0x11a   :  { %v120_v16 = vmul.f32 1.442695, %v117_v15 }
 0x11b   :  { %v107_v22 = vpop.permute.xlu1 %106 }
 0x11c   :  { %206 = vpow2.f32 %v120_v16  ;;  %vm109_vm5 = vcmp.eq.s32.totalorder %v101_v20, %v107_v22 }
 0x11d   :  { %v111_v24 = vsel %vm109_vm5, %v91_v10, 0.0 }
 0x122   :  { %v205_v17 = vpop.eup %204 }
 0x123   :  { %122 = vadd.xlane.f32.xlu0 %v205_v17 }
 0x126   :  { %v207_v19 = vpop.eup %206 }
 0x127   :  { %96 = vadd.xlane.f32.xlu0 %v90_v7  ;;  %124 = vadd.xlane.f32.xlu1 %v207_v19 }
 0x12b   :  { %98 = vadd.xlane.f32.xlu0 %v91_v10 }
 0x12f   :  { %112 = vadd.xlane.f32.xlu0 %v110_v23 }
 0x133   :  { %114 = vadd.xlane.f32.xlu0 %v111_v24 }
 0x1b0   :  { %v123_v26 = vpop.xlane.xlu0 %122 }
 0x1b1   :  { %208 = vlog2.f32 %v123_v26 }
 0x1b4   :  { %v125_v27 = vpop.xlane.xlu1 %124  ;;  %v97_v28 = vpop.xlane.xlu0 %96 }
 0x1b5   :  { %210 = vlog2.f32 %v125_v27  ;;  %v132_v36 = vsub.f32 %v97_v28, %v130_v32 }
 0x1b8   :  { %v99_v29 = vpop.xlane.xlu0 %98 }
 0x1b9   :  { %v133_v47 = vsub.f32 %v99_v29, %v131_v41 }
 0x1bb   :  { %v209_v30 = vpop.eup %208 }
 0x1bc   :  { %v127_v31 = vmul.f32 0.6931472, %v209_v30  ;;  %v113_v33 = vpop.xlane.xlu0 %112 }
 0x1bd   :  { %v134_v34 = vsub.f32 %v113_v33, %v93_v11 }
 0x1be   :  { %v136_v35 = vmul.f32 128.0, %v127_v31 }
 0x1bf   :  { %v211_v37 = vpop.eup %210  ;;  %v142_v38 = vsub.f32 %v134_v34, %v127_v31 }
 0x1c0   :  { %v129_v39 = vmul.f32 0.6931472, %v211_v37  ;;  %v138_v40 = vsub.f32 %v132_v36, %v136_v35  ;;  %v115_v42 = vpop.xlane.xlu0 %114 }
 0x1c1   :  { %v144_v43 = vmul.f32 0.8992126, %v142_v38  ;;  %v135_v44 = vsub.f32 %v115_v42, %v95_v14 }
 0x1c2   :  { %v140_v45 = vmul.f32 0.0007874016, %v138_v40  ;;  %v137_v46 = vmul.f32 128.0, %v129_v39 }
 0x1c3   :  { %v143_v48 = vsub.f32 %v135_v44, %v129_v39 }
 0x1c4   :  { %v139_v49 = vsub.f32 %v133_v47, %v137_v46  ;;  %v146_v50 = vadd.f32 %v144_v43, %v140_v45 }
 0x1c5   :  { %v145_v51 = vmul.f32 0.8992126, %v143_v48 }
 0x1c6   :  { %v141_v52 = vmul.f32 0.0007874016, %v139_v49  ;;  %v148_v53 = vsub.f32 -0.8095017, %v146_v50 }
 0x1c8   :  { %v147_v55 = vadd.f32 %v145_v51, %v141_v52  ;;  %v150_v57 = vmul.f32 %v197_v54, %v148_v53 }
 0x1ca   :  { %v149_v58 = vsub.f32 -0.8095017, %v147_v55  ;;  %v154_v60 = vsel %vm153_vm7, %v150_v57, 0.0 }
 0x1cc   :  { %v151_v59 = vmul.f32 %v198_v56, %v149_v58 }
 0x1ce   :  { %v155_v61 = vsel %vm153_vm7, %v151_v59, 0.0 }
 0x1cf   :  { %v156_v62 = vadd.f32 %v155_v61, %v154_v60 }
 0x1d1   :  { %v157_v63 = vrot.slane %v156_v62, 4 }
 0x1d3   :  { %v158_v2 = vadd.f32 %v157_v63, %v156_v62 }
 0x1d5   :  { %v159_v3 = vrot.slane %v158_v2, 2 }
 0x1d7   :  { %v160_v4 = vadd.f32 %v159_v3, %v158_v2 }
 0x1d9   :  { %v161_v5 = vrot.slane %v160_v4, 1 }
 0x1db   :  { %v162_v7 = vadd.f32 %v161_v5, %v160_v4 }
 0x1dd   :  { %v163_v0 = vadd.f32 %v162_v7, %v152_v6 }
 0x1df   :  { %165 = vst.msk [vmem:[#allocation2] sm:$0x1] %vm70_vm6, %v163_v0 }
 0x1e6   :  { %v169_v1 = vld [vmem:[#allocation2] sm:$0x1] }
 0x1e7   :  { %170 = vst.msk [vmem:[#allocation3] sm:$0x1] %vm70_vm6, %v169_v1 }
 0x1e8   :  { %223 = shalt.err (!%p220_p4)
}
 0x1e9   :  { %s224_s21 = scalar_lea.hbm %s299_s2, 16 }
 0x1ea   :  { %p225_p5 = scmp.ne.s32.totalorder %s299_s2, %s224_s21  ;;  %p228_p6 = scmp.lt.u32.totalorder %s224_s21, %s299_s2 }
 0x1ec   :  { %p230_p7 = pnand %p228_p6, %p225_p5 }
 0x1ee   :  { %233 = shalt.err (!%p230_p7)
}
 0x1ef   :  { %180 = dma.vmem_to_hbm [thread:$0]  %s178_s16, 16, %s299_s2, [#allocation4]  }
 0x1f0   :  { %234 = dma.done.wait [#allocation4], 16  }
 0x1f1   :  { %235 = vsyncadd [#allocation4], 4294967280 }
 0x1f2   :  { %184 = vsyncpa [#allocation4], 1 }

</bundles_post_ra>
